<compile_context>
chip_gen: v5e
topology: v5e:2x2
jax: 0.10.0
libtpu: 0.0.40
codegen_flags: <defaults>
</compile_context>

<pallas_src>
import jax
import jax.numpy as jnp
from jax.experimental import pallas as pl
from jax.experimental.pallas import tpu as pltpu


def _round_up(x, m):
    return ((x + m - 1) // m) * m


def bahdanau_kernel(q_ref, k_ref, w_dh_ref, b_dh_ref, w_eh_ref, b_eh_ref,
                    w_s_ref, b_s_ref, ctx_ref, att_ref):
    # q_ref: (BT, D)   k_ref: (BT, S, E)   weights: (in, out) / (1, out)
    # ctx_ref: (BT, NH)   att_ref: (BT, S)
    bt, s, e = k_ref.shape
    nh = w_eh_ref.shape[1]

    # Decoder-side projection: one (BT, D) x (D, NH) matmul.
    qn = jnp.dot(q_ref[...], w_dh_ref[...],
                 preferred_element_type=jnp.float32) + b_dh_ref[...]          # (BT, NH)

    # Encoder-side projection: single (BT*S, E) x (E, NH) matmul (fills MXU rows).
    kn = jnp.dot(k_ref[...].reshape(bt * s, e), w_eh_ref[...],
                 preferred_element_type=jnp.float32) + b_eh_ref[...]          # (BT*S, NH)
    kn3 = kn.reshape(bt, s, nh)

    # Additive attention energies.
    t = jnp.tanh(kn3 + qn[:, None, :])                                        # (BT, S, NH)

    # score Linear(NH -> 1): VPU multiply + lane reduce instead of an MXU matmul
    # with output free dim 1.  (b_score is added for fidelity; it cancels in softmax.)
    scores = jnp.sum(t * w_s_ref[...], axis=-1) + b_s_ref[...]                # (BT, S)

    # Numerically-stable softmax over the sequence axis.
    m = jnp.max(scores, axis=-1, keepdims=True)
    ex = jnp.exp(scores - m)
    inv_l = pl.reciprocal(jnp.sum(ex, axis=-1, keepdims=True), approx=True)   # EUP
    att = ex * inv_l                                                          # (BT, S)

    # Context = att-weighted sum of the *transformed* keys (as in the torch code).
    ctx = jnp.sum(att[:, :, None] * kn3, axis=1)                              # (BT, NH)

    ctx_ref[...] = ctx.astype(ctx_ref.dtype)
    att_ref[...] = att.astype(att_ref.dtype)


def bahdanau_attention(query, keys, params, *, block_b=None):
    """query: (1, B, D_dec) f32; keys: (B, S, E_enc) f32 -> ((B,1,NH), (B,1,S))."""
    w_eh, b_eh, w_dh, b_dh, w_s, b_s = params
    B, S, E = keys.shape
    D = query.shape[2]
    NH = w_eh.shape[1]

    if block_b is None:
        # Fill full sublanes (>=8); grow while the double-buffered keys tile stays
        # well under the VMEM budget (8 MiB cap keeps it safe even on v7x's 64 MiB).
        block_b = 8
        while (block_b < 128
               and block_b * 2 <= _round_up(B, 8)
               and 2 * (block_b * 2) * S * E * 4 <= (8 << 20)):
            block_b *= 2

    B_pad = _round_up(B, block_b)

    # Singleton-free, batch-first/feature-last layouts.
    q2 = jnp.squeeze(query, axis=0)                                  # (B, D)
    if B_pad != B:
        q2 = jnp.pad(q2, ((0, B_pad - B), (0, 0)))
        keys_p = jnp.pad(keys, ((0, B_pad - B), (0, 0), (0, 0)))
    else:
        keys_p = keys

    b_eh2 = b_eh.reshape(1, NH)
    b_dh2 = b_dh.reshape(1, NH)
    w_s2 = w_s.reshape(1, NH)
    b_s2 = b_s.reshape(1, 1)

    ctx2, att2 = pl.pallas_call(
        bahdanau_kernel,
        out_shape=(jax.ShapeDtypeStruct((B_pad, NH), jnp.float32),
                   jax.ShapeDtypeStruct((B_pad, S), jnp.float32)),
        grid=(B_pad // block_b,),
        in_specs=[
            pl.BlockSpec((block_b, D), lambda b: (b, 0)),        # query block
            pl.BlockSpec((block_b, S, E), lambda b: (b, 0, 0)),  # keys block (streamed)
            pl.BlockSpec((D, NH), lambda b: (0, 0)),             # W_dh (resident)
            pl.BlockSpec((1, NH), lambda b: (0, 0)),             # b_dh
            pl.BlockSpec((E, NH), lambda b: (0, 0)),             # W_eh
            pl.BlockSpec((1, NH), lambda b: (0, 0)),             # b_eh
            pl.BlockSpec((1, NH), lambda b: (0, 0)),             # W_score (row form)
            pl.BlockSpec((1, 1), lambda b: (0, 0)),              # b_score
        ],
        out_specs=(pl.BlockSpec((block_b, NH), lambda b: (b, 0)),
                   pl.BlockSpec((block_b, S), lambda b: (b, 0))),
        compiler_params=pltpu.CompilerParams(
            dimension_semantics=("parallel",),
            vmem_limit_bytes=32 * 1024 * 1024),
    )(q2, keys_p, w_dh, b_dh2, w_eh, b_eh2, w_s2, b_s2)

    ctx = ctx2[:B].reshape(B, 1, NH)
    att = att2[:B].reshape(B, 1, S)
    return ctx, att


def reference(query, keys, params):
    """Pure-JAX mirror of the PyTorch forward, for verification."""
    w_eh, b_eh, w_dh, b_dh, w_s, b_s = params
    qn = query @ w_dh + b_dh                         # (1, B, NH)
    kn = keys @ w_eh + b_eh                          # (B, S, NH)
    t = jnp.tanh(jnp.transpose(qn, (1, 0, 2)) + kn)  # (B, S, NH)
    sc = t @ w_s.T + b_s                             # (B, S, 1)
    sc = jnp.transpose(sc, (0, 2, 1))                # (B, 1, S)
    att = jax.nn.softmax(sc, axis=-1)
    ctx = jnp.einsum("bos,bsn->bon", att, kn)
    return ctx, att


if __name__ == "__main__":
    B, S = 2, 8
    E_ENC, D_DEC, NH = 32, 32, 32

    key = jax.random.PRNGKey(0)
    k1, k2, k3, k4, k5, k6, kq, kk = jax.random.split(key, 8)

    # Deterministic synthetic parameters (stored (in, out); score weight stored (1, NH)).
    w_eh = 0.1 * jax.random.normal(k1, (E_ENC, NH), dtype=jnp.float32)
    b_eh = 0.1 * jax.random.normal(k2, (NH,), dtype=jnp.float32)
    w_dh = 0.1 * jax.random.normal(k3, (D_DEC, NH), dtype=jnp.float32)
    b_dh = 0.1 * jax.random.normal(k4, (NH,), dtype=jnp.float32)
    w_s = 0.1 * jax.random.normal(k5, (1, NH), dtype=jnp.float32)
    b_s = 0.1 * jax.random.normal(k6, (1,), dtype=jnp.float32)
    params = (w_eh, b_eh, w_dh, b_dh, w_s, b_s)

    query = jax.random.normal(kq, (1, B, D_DEC), dtype=jnp.float32)  # decoder hidden
    keys = jax.random.normal(kk, (B, S, E_ENC), dtype=jnp.float32)   # encoder states

    ctx, att = jax.block_until_ready(bahdanau_attention(query, keys, params))
    ctx_ref, att_ref = reference(query, keys, params)

    assert ctx.shape == (B, 1, NH) and att.shape == (B, 1, S)
    # Tolerance accounts for the EUP approx-reciprocal in the softmax normalization.
    assert jnp.allclose(ctx, ctx_ref, atol=2e-3, rtol=2e-3)
    assert jnp.allclose(att, att_ref, atol=2e-3, rtol=2e-3)
    print("KERNEL_OK")
</pallas_src>

<mosaic_0001>
module attributes {stable_mosaic.version = 11 : i64} {
  func.func @bahdanau_kernel(%arg0: i32, %arg1: memref<8x32xf32, #tpu.memory_space<vmem>>, %arg2: memref<8x8x32xf32, #tpu.memory_space<vmem>>, %arg3: memref<32x32xf32, #tpu.memory_space<vmem>>, %arg4: memref<1x32xf32, #tpu.memory_space<vmem>>, %arg5: memref<32x32xf32, #tpu.memory_space<vmem>>, %arg6: memref<1x32xf32, #tpu.memory_space<vmem>>, %arg7: memref<1x32xf32, #tpu.memory_space<vmem>>, %arg8: memref<1x1xf32, #tpu.memory_space<vmem>>, %arg9: memref<8x32xf32, #tpu.memory_space<vmem>>, %arg10: memref<8x8xf32, #tpu.memory_space<vmem>>) attributes {dimension_semantics = [#tpu.dimension_semantics<parallel>], iteration_bounds = array<i64: 1>, scalar_prefetch = 0 : i64, scratch_operands = 0 : i64, tpu.core_type = #tpu.core_type<tc>, window_params = [{transform_indices = @transform_0, window_bounds = array<i64: 8, 32>}, {transform_indices = @transform_1, window_bounds = array<i64: 8, 8, 32>}, {pipeline_mode = #tpu.pipeline_mode<synchronous>, transform_indices = @transform_2, window_bounds = array<i64: 32, 32>}, {pipeline_mode = #tpu.pipeline_mode<synchronous>, transform_indices = @transform_3, window_bounds = array<i64: 1, 32>}, {pipeline_mode = #tpu.pipeline_mode<synchronous>, transform_indices = @transform_4, window_bounds = array<i64: 32, 32>}, {pipeline_mode = #tpu.pipeline_mode<synchronous>, transform_indices = @transform_5, window_bounds = array<i64: 1, 32>}, {pipeline_mode = #tpu.pipeline_mode<synchronous>, transform_indices = @transform_6, window_bounds = array<i64: 1, 32>}, {pipeline_mode = #tpu.pipeline_mode<synchronous>, transform_indices = @transform_7, window_bounds = array<i64: 1, 1>}, {transform_indices = @transform_8, window_bounds = array<i64: 8, 32>}, {transform_indices = @transform_9, window_bounds = array<i64: 8, 8>}]} {
    %c0 = arith.constant 0 : index
    %c0_0 = arith.constant 0 : index
    %0 = vector.load %arg1[%c0, %c0_0] : memref<8x32xf32, #tpu.memory_space<vmem>>, vector<8x32xf32>
    %c0_1 = arith.constant 0 : index
    %c0_2 = arith.constant 0 : index
    %1 = vector.load %arg3[%c0_1, %c0_2] : memref<32x32xf32, #tpu.memory_space<vmem>>, vector<32x32xf32>
    %cst = arith.constant dense<0.000000e+00> : vector<8x32xf32>
    %2 = tpu.matmul %0, %1, %cst {dimension_numbers = #tpu.dot_dimension_numbers<[1], [0], [0], [1], [0, 0, 1, 1], [], []>} : vector<8x32xf32>, vector<32x32xf32>, vector<8x32xf32> -> vector<8x32xf32>
    %c0_3 = arith.constant 0 : index
    %c0_4 = arith.constant 0 : index
    %3 = vector.load %arg4[%c0_3, %c0_4] : memref<1x32xf32, #tpu.memory_space<vmem>>, vector<1x32xf32>
    %4 = vector.broadcast %3 : vector<1x32xf32> to vector<8x32xf32>
    %5 = arith.addf %2, %4 : vector<8x32xf32>
    %c0_5 = arith.constant 0 : index
    %c0_6 = arith.constant 0 : index
    %c0_7 = arith.constant 0 : index
    %6 = vector.load %arg2[%c0_5, %c0_6, %c0_7] : memref<8x8x32xf32, #tpu.memory_space<vmem>>, vector<8x8x32xf32>
    %7 = vector.shape_cast %6 : vector<8x8x32xf32> to vector<64x32xf32>
    %c0_8 = arith.constant 0 : index
    %c0_9 = arith.constant 0 : index
    %8 = vector.load %arg5[%c0_8, %c0_9] : memref<32x32xf32, #tpu.memory_space<vmem>>, vector<32x32xf32>
    %cst_10 = arith.constant dense<0.000000e+00> : vector<64x32xf32>
    %9 = tpu.matmul %7, %8, %cst_10 {dimension_numbers = #tpu.dot_dimension_numbers<[1], [0], [0], [1], [0, 0, 1, 1], [], []>} : vector<64x32xf32>, vector<32x32xf32>, vector<64x32xf32> -> vector<64x32xf32>
    %c0_11 = arith.constant 0 : index
    %c0_12 = arith.constant 0 : index
    %10 = vector.load %arg6[%c0_11, %c0_12] : memref<1x32xf32, #tpu.memory_space<vmem>>, vector<1x32xf32>
    %11 = vector.broadcast %10 : vector<1x32xf32> to vector<64x32xf32>
    %12 = arith.addf %9, %11 : vector<64x32xf32>
    %13 = vector.shape_cast %12 : vector<64x32xf32> to vector<8x8x32xf32>
    %14 = vector.shape_cast %5 : vector<8x32xf32> to vector<8x1x32xf32>
    %15 = vector.broadcast %14 : vector<8x1x32xf32> to vector<8x8x32xf32>
    %16 = arith.addf %13, %15 : vector<8x8x32xf32>
    %17 = math.tanh %16 : vector<8x8x32xf32>
    %c0_13 = arith.constant 0 : index
    %c0_14 = arith.constant 0 : index
    %18 = vector.load %arg7[%c0_13, %c0_14] : memref<1x32xf32, #tpu.memory_space<vmem>>, vector<1x32xf32>
    %19 = vector.shape_cast %18 : vector<1x32xf32> to vector<1x1x32xf32>
    %20 = vector.broadcast %19 : vector<1x1x32xf32> to vector<8x8x32xf32>
    %21 = arith.mulf %17, %20 : vector<8x8x32xf32>
    %cst_15 = arith.constant dense<0.000000e+00> : vector<8x8xf32>
    %22 = vector.multi_reduction <add>, %21, %cst_15 [2] : vector<8x8x32xf32> to vector<8x8xf32>
    %c0_16 = arith.constant 0 : index
    %c0_17 = arith.constant 0 : index
    %23 = vector.load %arg8[%c0_16, %c0_17] : memref<1x1xf32, #tpu.memory_space<vmem>>, vector<1x1xf32>
    %24 = vector.broadcast %23 : vector<1x1xf32> to vector<8x8xf32>
    %25 = arith.addf %22, %24 : vector<8x8xf32>
    %cst_18 = arith.constant dense<0xFF800000> : vector<8xf32>
    %26 = vector.multi_reduction <maximumf>, %25, %cst_18 [1] : vector<8x8xf32> to vector<8xf32>
    %27 = vector.shape_cast %26 : vector<8xf32> to vector<8x1xf32>
    %28 = vector.broadcast %27 : vector<8x1xf32> to vector<8x8xf32>
    %29 = arith.subf %25, %28 : vector<8x8xf32>
    %30 = math.exp %29 : vector<8x8xf32>
    %cst_19 = arith.constant dense<0.000000e+00> : vector<8xf32>
    %31 = vector.multi_reduction <add>, %30, %cst_19 [1] : vector<8x8xf32> to vector<8xf32>
    %32 = vector.shape_cast %31 : vector<8xf32> to vector<8x1xf32>
    %33 = tpu.reciprocal %32 {approx = true} : vector<8x1xf32> -> vector<8x1xf32>
    %34 = vector.broadcast %33 : vector<8x1xf32> to vector<8x8xf32>
    %35 = arith.mulf %30, %34 : vector<8x8xf32>
    %36 = vector.shape_cast %35 : vector<8x8xf32> to vector<8x8x1xf32>
    %37 = vector.broadcast %36 : vector<8x8x1xf32> to vector<8x8x32xf32>
    %38 = arith.mulf %37, %13 : vector<8x8x32xf32>
    %cst_20 = arith.constant dense<0.000000e+00> : vector<8x32xf32>
    %39 = vector.multi_reduction <add>, %38, %cst_20 [1] : vector<8x8x32xf32> to vector<8x32xf32>
    %c0_21 = arith.constant 0 : index
    %c0_22 = arith.constant 0 : index
    %40 = vector.load %arg9[%c0_21, %c0_22] : memref<8x32xf32, #tpu.memory_space<vmem>>, vector<8x32xf32>
    tpu.vector_store %arg9[%c0_21, %c0_22], %39 {strides = array<i32>} : memref<8x32xf32, #tpu.memory_space<vmem>>, vector<8x32xf32>,
    %c0_23 = arith.constant 0 : index
    %c0_24 = arith.constant 0 : index
    %41 = vector.load %arg10[%c0_23, %c0_24] : memref<8x8xf32, #tpu.memory_space<vmem>>, vector<8x8xf32>
    tpu.vector_store %arg10[%c0_23, %c0_24], %35 {strides = array<i32>} : memref<8x8xf32, #tpu.memory_space<vmem>>, vector<8x8xf32>,
    return
  }
  func.func @transform_0(%arg0: i32) -> (i32, i32) {
    %c0_i32 = arith.constant 0 : i32
    %c0_i32_0 = arith.constant 0 : i32
    return %arg0, %c0_i32 : i32, i32
  }
  func.func @transform_1(%arg0: i32) -> (i32, i32, i32) {
    %c0_i32 = arith.constant 0 : i32
    %c0_i32_0 = arith.constant 0 : i32
    %c0_i32_1 = arith.constant 0 : i32
    return %arg0, %c0_i32, %c0_i32_0 : i32, i32, i32
  }
  func.func @transform_2(%arg0: i32) -> (i32, i32) {
    %c0_i32 = arith.constant 0 : i32
    %c0_i32_0 = arith.constant 0 : i32
    %c0_i32_1 = arith.constant 0 : i32
    return %c0_i32, %c0_i32_0 : i32, i32
  }
  func.func @transform_3(%arg0: i32) -> (i32, i32) {
    %c0_i32 = arith.constant 0 : i32
    %c0_i32_0 = arith.constant 0 : i32
    %c0_i32_1 = arith.constant 0 : i32
    return %c0_i32, %c0_i32_0 : i32, i32
  }
  func.func @transform_4(%arg0: i32) -> (i32, i32) {
    %c0_i32 = arith.constant 0 : i32
    %c0_i32_0 = arith.constant 0 : i32
    %c0_i32_1 = arith.constant 0 : i32
    return %c0_i32, %c0_i32_0 : i32, i32
  }
  func.func @transform_5(%arg0: i32) -> (i32, i32) {
    %c0_i32 = arith.constant 0 : i32
    %c0_i32_0 = arith.constant 0 : i32
    %c0_i32_1 = arith.constant 0 : i32
    return %c0_i32, %c0_i32_0 : i32, i32
  }
  func.func @transform_6(%arg0: i32) -> (i32, i32) {
    %c0_i32 = arith.constant 0 : i32
    %c0_i32_0 = arith.constant 0 : i32
    %c0_i32_1 = arith.constant 0 : i32
    return %c0_i32, %c0_i32_0 : i32, i32
  }
  func.func @transform_7(%arg0: i32) -> (i32, i32) {
    %c0_i32 = arith.constant 0 : i32
    %c0_i32_0 = arith.constant 0 : i32
    %c0_i32_1 = arith.constant 0 : i32
    return %c0_i32, %c0_i32_0 : i32, i32
  }
  func.func @transform_8(%arg0: i32) -> (i32, i32) {
    %c0_i32 = arith.constant 0 : i32
    %c0_i32_0 = arith.constant 0 : i32
    return %arg0, %c0_i32 : i32, i32
  }
  func.func @transform_9(%arg0: i32) -> (i32, i32) {
    %c0_i32 = arith.constant 0 : i32
    %c0_i32_0 = arith.constant 0 : i32
    return %arg0, %c0_i32 : i32, i32
  }
}

</mosaic_0001>

<bundles_post_ra>
// kernel: tpu_custom_call.1
= control target key start
LH: loop header
LB: loop body
LE: loop exit
PB: predicated region body
PF: predicated region fallthrough
CT: control target
= control target key end

     0   :  { %s1076_s0 = inlined_call_operand.hbm [shape: f32[8,32], index: 0, kind: input, shape index: {}]   ;;  %s1077_s1 = inlined_call_operand.hbm [shape: f32[8,8,32], index: 1, kind: input, shape index: {}]   ;;  %s1078_s2 = inlined_call_operand.hbm [shape: f32[32,32], index: 2, kind: input, shape index: {}]   ;;  %s1079_s3 = inlined_call_operand.vmem [shape: f32[1,32], index: 3, kind: input, shape index: {}]   ;;  %s1080_s4 = inlined_call_operand.hbm [shape: f32[32,32], index: 4, kind: input, shape index: {}]   ;;  %s1081_s5 = inlined_call_operand.vmem [shape: f32[1,32], index: 5, kind: input, shape index: {}]   ;;  %s1082_s6 = inlined_call_operand.vmem [shape: f32[1,32], index: 6, kind: input, shape index: {}]   ;;  %s1083_s7 = inlined_call_operand.<no memory space> [shape: f32[1,1], index: 7, kind: input, shape index: {}]   ;;  %s1084_s8 = inlined_call_operand.hbm [shape: f32[8,32], index: 8, kind: output, shape index: {0}]   ;;  %s1085_s9 = inlined_call_operand.hbm [shape: f32[8,8], index: 9, kind: output, shape index: {1}]  }
   0x1   :  { %v15_v0 = vstv %s1083_s7 }
   0x2   :  { %16 = vst [vmem:[#allocation2] sm:$0x1] %v15_v0 }
   0x3   :  { %17 = vsyncpa [#allocation4], 0 }
   0x4   :  { %18 = vsyncpa [#allocation7], 0 }
   0x5   :  { %19 = vsyncpa [#allocation10], 0 }
   0x6   :  { %20 = vsyncpa [#allocation5], 0  ;;  %s37_s13 = sshll.u32 %s1077_s1, 4  ;;  %s38_s13 = int_to_ptr.hbm [resolvable:$true] %s37_s13 }
   0x7   :  { %21 = vsyncpa [#allocation13], 0  ;;  %s850_s14 = smov [#allocation6]   ;;  %s27_s18 = sshll.u32 %s1076_s0, 4  ;;  %s28_s18 = int_to_ptr.hbm [resolvable:$true] %s27_s18 }
   0x8   :  { %s39_s15 = sshll.u32 %s850_s14, 4  ;;  %s851_s19 = smov 128   ;;  %s40_s15 = int_to_ptr.vmem [resolvable:$true] %s39_s15 }
   0x9   :  { %s852_s7 = smov 8   ;;  %s853_s20 = smov [#allocation3]  }
   0xa   :  { %45 = dma.hbm_to_vmem [thread:$0]  %s38_s13, 1024, %s40_s15, [#allocation7], %s851_s19, %s851_s19, %s852_s7  }
   0xb   :  { %s29_s21 = sshll.u32 %s853_s20, 4  ;;  %s50_s24 = sshll.u32 %s1078_s2, 4  ;;  %s30_s21 = int_to_ptr.vmem [resolvable:$true] %s29_s21  ;;  %s51_s24 = int_to_ptr.hbm [resolvable:$true] %s50_s24 }
   0xc   :  { %32 = dma.hbm_to_vmem [thread:$0]  %s28_s18, 128, %s30_s21, [#allocation4]  }
   0xd   :  { %s65_s26 = sshll.u32 %s1080_s4, 4  ;;  %s854_s27 = smov [#allocation8]   ;;  %s66_s26 = int_to_ptr.hbm [resolvable:$true] %s65_s26 }
   0xe   :  { %s52_s28 = sshll.u32 %s854_s27, 4  ;;  %s855_s0 = smov [#allocation9]   ;;  %s53_s28 = int_to_ptr.vmem [resolvable:$true] %s52_s28 }
   0xf   :  { %58 = dma.hbm_to_vmem [thread:$0]  %s51_s24, 512, %s53_s28, [#allocation7], %s851_s19, %s851_s19, %s852_s7  }
  0x10   :  { %s67_s29 = sshll.u32 %s855_s0, 4  ;;  %s68_s29 = int_to_ptr.vmem [resolvable:$true] %s67_s29 }
  0x11   :  { %73 = dma.hbm_to_vmem [thread:$0]  %s66_s26, 512, %s68_s29, [#allocation10], %s851_s19, %s851_s19, %s852_s7  }
  0x12   :  { %840 = dma.done.wait [#allocation4], 128  }
  0x13   :  { %841 = vsyncadd [#allocation4], 4294967168 }
  0x14   :  { %842 = dma.done.wait [#allocation7], 1536  }
  0x15   :  { %843 = vsyncadd [#allocation7], 4294965760 }
  0x16   :  { %844 = dma.done.wait [#allocation10], 512  }
  0x17   :  { %845 = vsyncadd [#allocation10], 4294966784  ;;  %v100_v1 = vld [vmem:[#allocation8 + $0x18] sm:$0xff]  ;;  %v99_v3 = vld [vmem:[#allocation8 + $0x10] sm:$0xff]  ;;  %vm105_vm0 = vcmask 261120   ;;  %v856_v39 = vmov 0  }
  0x18   :  { %v140_v2 = vld [vmem:[#allocation9 + $0x18] sm:$0xff]  ;;  %121 = vmatpush.msra.mxu0 %v100_v1  ;;  %v139_v4 = vld [vmem:[#allocation9 + $0x10] sm:$0xff]  ;;  %v98_v5 = vld [vmem:[#allocation8 + $0x8] sm:$0xff]  ;;  %655 = vset.pattern.permute.xlu1 %v856_v39  ;;  %vm319_vm1 = vcmask 1041409   ;;  %vm321_vm2 = vcmask 1042434   ;;  %vm323_vm3 = vcmask 1043459  }
  0x19   :  { %181 = vmatpush.msra.mxu1 %v140_v2  ;;  %638 = vmatpush.msra.mxu2 %v140_v2  ;;  %v138_v6 = vld [vmem:[#allocation9 + $0x8] sm:$0xff]  ;;  %v97_v7 = vld [vmem:[#allocation8] sm:$0xff]  ;;  %v96_v9 = vld [vmem:[#allocation3] sm:$0xff]  ;;  %vm325_vm4 = vcmask 1044484   ;;  %vm327_vm5 = vcmask 1045509   ;;  %vm329_vm6 = vcmask 1046534  }
  0x1a   :  { %639 = vmatpush.msra.mxu3 %v140_v2  ;;  %122 = vmatpush.msra.mxu0 %v99_v3  ;;  %v137_v8 = vld [vmem:[#allocation9] sm:$0xff]  ;;  %v131_v11 = vld [vmem:[#allocation6 + $0x10] sm:$0xff]  ;;  %v134_v12 = vld [vmem:[#allocation6 + $0x28] sm:$0xff]  ;;  %vm331_vm7 = vcmask 1047559   ;;  %vm334_vm8 = vcmask 64512   ;;  %s612_s14 = sshll.u32 %s1085_s9, 4  ;;  %s613_s14 = int_to_ptr.hbm [resolvable:$true] %s612_s14 }
  0x1b   :  { %182 = vmatpush.msra.mxu1 %v139_v4  ;;  %640 = vmatpush.msra.mxu2 %v139_v4  ;;  %v129_v10 = vld [vmem:[#allocation6] sm:$0xff]  ;;  %v130_v13 = vld [vmem:[#allocation6 + $0x8] sm:$0xff]  ;;  %v132_v14 = vld [vmem:[#allocation6 + $0x18] sm:$0xff]  ;;  %s858_s9 = smov [#allocation11]   ;;  %s601_s18 = sshll.u32 %s1084_s8, 4  ;;  %s602_s18 = int_to_ptr.hbm [resolvable:$true] %s601_s18 }
  0x1c   :  { %641 = vmatpush.msra.mxu3 %v139_v4  ;;  %123 = vmatpush.msra.mxu0 %v98_v5  ;;  %v135_v15 = vld [vmem:[#allocation6 + $0x30] sm:$0xff]  ;;  %v133_v16 = vld [vmem:[#allocation6 + $0x20] sm:$0xff]  ;;  %v136_v17 = vld [vmem:[#allocation6 + $0x38] sm:$0xff]  ;;  %s599_s15 = sshll.u32 %s858_s9, 4  ;;  %s600_s15 = int_to_ptr.vmem [resolvable:$true] %s599_s15 }
  0x1d   :  { %183 = vmatpush.msra.mxu1 %v138_v6  ;;  %642 = vmatpush.msra.mxu2 %v138_v6  ;;  %v658_v18 = vld [vmem:[%s1079_s3] ss:$0 sm:$0xff] }
  0x1e   :  { %643 = vmatpush.msra.mxu3 %v138_v6  ;;  %124 = vmatpush.msra.mxu0 %v97_v7  ;;  %v659_v19 = vld [vmem:[%s1081_s5] ss:$0 sm:$0xff] }
  0x1f   :  { %184 = vmatpush.msra.mxu1 %v137_v8  ;;  %644 = vmatpush.msra.mxu2 %v137_v8  ;;  %v951_v38 = vld [vmem:[%s1082_s6] ss:$0 sm:$0xff]  ;;  %s857_s6 = smov [#allocation12]  }
  0x20   :  { %645 = vmatpush.msra.mxu3 %v137_v8  ;;  %629 = vmatmul.msk.f32.vlgmr.msra.gmra.mxu0 %vm105_vm0, %v96_v9  ;;  %s610_s11 = sshll.u32 %s857_s6, 4  ;;  %s611_s11 = int_to_ptr.vmem [resolvable:$true] %s610_s11 }
  0x21   :  { %630 = vmatmul.msk.f32.vlgmr.msra.gmra.mxu1 %vm105_vm0, %v129_v10  ;;  %632 = vmatmul.msk.f32.vlgmr.msra.gmra.mxu2 %vm105_vm0, %v131_v11 }
  0x22   :  { %635 = vmatmul.msk.f32.vlgmr.msra.gmra.mxu3 %vm105_vm0, %v134_v12  ;;  %657 = vset.pattern.permute.xlu2 %v856_v39 }
  0x23   :  { %656 = vset.pattern.permute.xlu0 %v856_v39 }
  0x29   :  { %631 = vmatmul.msk.f32.gmra.mxu1 %vm105_vm0, %v130_v13  ;;  %633 = vmatmul.msk.f32.gmra.mxu2 %vm105_vm0, %v132_v14 }
  0x2a   :  { %636 = vmatmul.msk.f32.gmra.mxu3 %vm105_vm0, %v135_v15 }
  0x31   :  { %634 = vmatmul.msk.f32.gmra.mxu2 %vm105_vm0, %v133_v16 }
  0x32   :  { %637 = vmatmul.msk.f32.gmra.mxu3 %vm105_vm0, %v136_v17 }
  0x9d   :  { %v126_v20 = vpop.f32.mrf.mxu0 }
  0x9e   :  { %v186_v21 = vpop.f32.mrf.mxu1  ;;  %v127_v22 = vadd.f32 %v658_v18, %v126_v20 }
  0x9f   :  { %v939_v23 = vadd.f32 %v659_v19, %v186_v21 }
  0xa0   :  { %v218_v24 = vperm.slane %v127_v22, 0  ;;  %v212_v25 = vrot.slane %v127_v22, 2  ;;  %v215_v26 = vrot.slane %v127_v22, 5  ;;  %v211_v35 = vrot.slane %v127_v22, 1 }
  0xa1   :  { %v213_v41 = vrot.slane %v127_v22, 3  ;;  %v214_v55 = vrot.slane %v127_v22, 4  ;;  %v217_v56 = vrot.slane %v127_v22, 7  ;;  %v216_v59 = vrot.slane %v127_v22, 6  ;;  %v661_v22 = vld [vmem:[#allocation2] ss:$0 sm:$0xff] }
  0xa2   :  { %v234_v27 = vadd.f32 %v218_v24, %v939_v23  ;;  %v220_v28 = vperm.slane %v212_v25, 0  ;;  %v223_v29 = vperm.slane %v215_v26, 0  ;;  %v219_v43 = vperm.slane %v211_v35, 0 }
  0xa3   :  { %v221_v49 = vperm.slane %v213_v41, 0  ;;  %v222_v61 = vperm.slane %v214_v55, 0  ;;  %v225_v63 = vperm.slane %v217_v56, 0  ;;  %v224_v6 = vperm.slane %v216_v59, 0 }
  0xa4   :  { %662 = vtanh.f32 %v234_v27  ;;  %v192_v30 = vpop.f32.mrf.mxu2 }
  0xa5   :  { %v201_v31 = vpop.f32.mrf.mxu3  ;;  %v942_v32 = vadd.f32 %v659_v19, %v192_v30 }
  0xa6   :  { %v944_v33 = vadd.f32 %v659_v19, %v201_v31  ;;  %v189_v34 = vpop.f32.mrf.mxu1  ;;  %v309_v31 = vlaneseq }
  0xa7   :  { %v236_v36 = vadd.f32 %v220_v28, %v942_v32  ;;  %v953_v40 = vadd.f32 %v659_v19, %v189_v34 }
  0xa8   :  { %v239_v37 = vadd.f32 %v223_v29, %v944_v33  ;;  %v984_v34 = vand.u32 127, %v309_v31 }
  0xa9   :  { %664 = vtanh.f32 %v236_v36  ;;  %v235_v45 = vadd.f32 %v219_v43, %v953_v40 }
  0xaa   :  { %v663_v42 = vpop.eup %662  ;;  %666 = vtanh.f32 %v239_v37 }
  0xab   :  { %v254_v44 = vmul.f32 %v663_v42, %v951_v38  ;;  %668 = vtanh.f32 %v235_v45 }
  0xac   :  { %v195_v46 = vpop.f32.mrf.mxu2 }
  0xad   :  { %v204_v47 = vpop.f32.mrf.mxu3  ;;  %v957_v48 = vadd.f32 %v659_v19, %v195_v46  ;;  %v262_v50 = vsel %vm105_vm0, %v254_v44, 0.0 }
  0xae   :  { %263 = vadd.xlane.f32.xlu0 %v262_v50  ;;  %v964_v0 = vadd.f32 %v659_v19, %v204_v47 }
  0xaf   :  { %v665_v51 = vpop.eup %664  ;;  %v237_v52 = vadd.f32 %v221_v49, %v957_v48 }
  0xb0   :  { %v667_v53 = vpop.eup %666  ;;  %v256_v54 = vmul.f32 %v665_v51, %v951_v38  ;;  %v240_v10 = vadd.f32 %v224_v6, %v964_v0 }
  0xb1   :  { %670 = vtanh.f32 %v237_v52  ;;  %v259_v57 = vmul.f32 %v667_v53, %v951_v38  ;;  %v669_v4 = vpop.eup %668 }
  0xb2   :  { %v268_v58 = vsel %vm105_vm0, %v256_v54, 0.0  ;;  %v255_v11 = vmul.f32 %v669_v4, %v951_v38 }
  0xb3   :  { %269 = vadd.xlane.f32.xlu1 %v268_v58  ;;  %v277_v3 = vsel %vm105_vm0, %v259_v57, 0.0 }
  0xb4   :  { %v198_v60 = vpop.f32.mrf.mxu2  ;;  %v265_v13 = vsel %vm105_vm0, %v255_v11, 0.0 }
  0xb5   :  { %v207_v62 = vpop.f32.mrf.mxu3  ;;  %v966_v1 = vadd.f32 %v659_v19, %v198_v60 }
  0xb6   :  { %v968_v2 = vadd.f32 %v659_v19, %v207_v62  ;;  %278 = vadd.xlane.f32.xlu0 %v277_v3 }
  0xb7   :  { %v671_v5 = vpop.eup %670  ;;  %v238_v7 = vadd.f32 %v222_v61, %v966_v1 }
  0xb8   :  { %v241_v8 = vadd.f32 %v225_v63, %v968_v2  ;;  %v257_v9 = vmul.f32 %v671_v5, %v951_v38 }
  0xb9   :  { %672 = vtanh.f32 %v238_v7 }
  0xba   :  { %674 = vtanh.f32 %v241_v8  ;;  %v271_v12 = vsel %vm105_vm0, %v257_v9, 0.0 }
  0xbb   :  { %272 = vadd.xlane.f32.xlu2 %v271_v12  ;;  %676 = vtanh.f32 %v240_v10 }
  0xbe   :  { %266 = vadd.xlane.f32.xlu0 %v265_v13 }
  0xbf   :  { %v673_v14 = vpop.eup %672 }
  0xc0   :  { %v675_v15 = vpop.eup %674  ;;  %v258_v16 = vmul.f32 %v673_v14, %v951_v38 }
  0xc1   :  { %v261_v17 = vmul.f32 %v675_v15, %v951_v38  ;;  %v677_v19 = vpop.eup %676 }
  0xc2   :  { %v274_v18 = vsel %vm105_vm0, %v258_v16, 0.0  ;;  %v260_v21 = vmul.f32 %v677_v19, %v951_v38 }
  0xc3   :  { %275 = vadd.xlane.f32.xlu2 %v274_v18  ;;  %v283_v20 = vsel %vm105_vm0, %v261_v17, 0.0 }
  0xc4   :  { %v280_v24 = vsel %vm105_vm0, %v260_v21, 0.0 }
  0xc6   :  { %284 = vadd.xlane.f32.xlu0 %v283_v20 }
  0xcb   :  { %281 = vadd.xlane.f32.xlu2 %v280_v24 }
  0xcc   :  { %290 = vperm.xlu1 %655, %v661_v22  }
 0x121   :  { %v264_v25 = vpop.xlane.xlu0 %263 }
 0x126   :  { %v270_v28 = vpop.xlane.xlu1 %269 }
 0x129   :  { %v279_v26 = vpop.xlane.xlu0 %278 }
 0x12e   :  { %v273_v27 = vpop.xlane.xlu2 %272 }
 0x131   :  { %v267_v30 = vpop.xlane.xlu0 %266 }
 0x136   :  { %v276_v29 = vpop.xlane.xlu2 %275 }
 0x139   :  { %v285_v47 = vpop.xlane.xlu0 %284 }
 0x13e   :  { %v291_v35 = vpop.permute.xlu1 %290  ;;  %v282_v36 = vpop.xlane.xlu2 %281 }
 0x13f   :  { %v293_v37 = vadd.f32 %v291_v35, %v264_v25  ;;  %v294_v39 = vadd.f32 %v291_v35, %v267_v30  ;;  %v295_v41 = vadd.f32 %v291_v35, %v270_v28  ;;  %v296_v38 = vadd.f32 %v291_v35, %v273_v27 }
 0x140   :  { %v297_v42 = vadd.f32 %v291_v35, %v276_v29  ;;  %v298_v43 = vadd.f32 %v291_v35, %v279_v26  ;;  %v299_v49 = vadd.f32 %v291_v35, %v282_v36  ;;  %v300_v50 = vadd.f32 %v291_v35, %v285_v47 }
 0x141   :  { %v311_v44 = vperm.slane %v293_v37, %v984_v34  ;;  %v312_v45 = vperm.slane %v294_v39, %v984_v34  ;;  %v313_v46 = vperm.slane %v295_v41, %v984_v34  ;;  %v314_v51 = vperm.slane %v296_v38, %v984_v34 }
 0x142   :  { %v315_v53 = vperm.slane %v297_v42, %v984_v34  ;;  %v316_v55 = vperm.slane %v298_v43, %v984_v34  ;;  %v317_v57 = vperm.slane %v299_v49, %v984_v34  ;;  %v318_v59 = vperm.slane %v300_v50, %v984_v34 }
 0x143   :  { %v320_v52 = vsel %vm319_vm1, %v312_v45, %v311_v44 }
 0x144   :  { %v322_v54 = vsel %vm321_vm2, %v313_v46, %v320_v52 }
 0x145   :  { %v324_v56 = vsel %vm323_vm3, %v314_v51, %v322_v54 }
 0x146   :  { %v326_v58 = vsel %vm325_vm4, %v315_v53, %v324_v56 }
 0x147   :  { %v328_v60 = vsel %vm327_vm5, %v316_v55, %v326_v58 }
 0x148   :  { %v330_v61 = vsel %vm329_vm6, %v317_v57, %v328_v60 }
 0x149   :  { %v332_v62 = vsel %vm331_vm7, %v318_v59, %v330_v61 }
 0x14a   :  { %v335_v63 = vsel %vm334_vm8, %v332_v62, -inf }
 0x14b   :  { %336 = vmax.xlane.f32.xlu2 %v335_v63 }
 0x1be   :  { %v337_v3 = vpop.xlane.xlu2 %336 }
 0x1bf   :  { %v341_v4 = vperm.slane %v337_v3, 2  ;;  %v340_v5 = vperm.slane %v337_v3, 1  ;;  %v339_v6 = vperm.slane %v337_v3, 0  ;;  %v342_v10 = vperm.slane %v337_v3, 3 }
 0x1c0   :  { %v344_v11 = vperm.slane %v337_v3, 5  ;;  %v343_v18 = vperm.slane %v337_v3, 4  ;;  %v346_v20 = vperm.slane %v337_v3, 7  ;;  %v345_v28 = vperm.slane %v337_v3, 6 }
 0x1c1   :  { %v357_v7 = vsub.f32 %v295_v41, %v341_v4  ;;  %v356_v8 = vsub.f32 %v294_v39, %v340_v5  ;;  %v355_v9 = vsub.f32 %v293_v37, %v339_v6  ;;  %v358_v15 = vsub.f32 %v296_v38, %v342_v10 }
 0x1c2   :  { %v360_v16 = vsub.f32 %v298_v43, %v344_v11  ;;  %v359_v25 = vsub.f32 %v297_v42, %v343_v18  ;;  %v362_v26 = vsub.f32 %v300_v50, %v346_v20  ;;  %v361_v35 = vsub.f32 %v299_v49, %v345_v28 }
 0x1c3   :  { %v367_v12 = vmul.f32 1.442695, %v357_v7  ;;  %v365_v13 = vmul.f32 1.442695, %v356_v8  ;;  %v363_v14 = vmul.f32 1.442695, %v355_v9 }
 0x1c4   :  { %v369_v17 = vmul.f32 1.442695, %v358_v15  ;;  %v373_v19 = vmul.f32 1.442695, %v360_v16  ;;  %v371_v27 = vmul.f32 1.442695, %v359_v25 }
 0x1c5   :  { %678 = vpow2.f32 %v367_v12  ;;  %v377_v29 = vmul.f32 1.442695, %v362_v26  ;;  %v375_v36 = vmul.f32 1.442695, %v361_v35 }
 0x1c6   :  { %680 = vpow2.f32 %v365_v13 }
 0x1c7   :  { %682 = vpow2.f32 %v363_v14 }
 0x1c8   :  { %684 = vpow2.f32 %v369_v17 }
 0x1c9   :  { %686 = vpow2.f32 %v373_v19 }
 0x1ca   :  { %688 = vpow2.f32 %v371_v27 }
 0x1cb   :  { %v1002_v21 = vpop.eup %678  ;;  %690 = vpow2.f32 %v377_v29 }
 0x1cc   :  { %v681_v22 = vpop.eup %680  ;;  %394 = vperm.xlu1 %655, %v1002_v21   ;;  %692 = vpow2.f32 %v375_v36 }
 0x1cd   :  { %v683_v24 = vpop.eup %682  ;;  %391 = vperm.xlu2 %657, %v681_v22  }
 0x1ce   :  { %388 = vperm.xlu0 %656, %v683_v24   ;;  %v685_v30 = vpop.eup %684 }
 0x1cf   :  { %v687_v31 = vpop.eup %686 }
 0x1d0   :  { %v689_v37 = vpop.eup %688 }
 0x1d1   :  { %v691_v39 = vpop.eup %690 }
 0x1d2   :  { %v693_v41 = vpop.eup %692 }
 0x1d4   :  { %397 = vperm.xlu1 %655, %v685_v30  }
 0x1d5   :  { %403 = vperm.xlu2 %657, %v687_v31  }
 0x1dc   :  { %400 = vperm.xlu1 %655, %v689_v37  }
 0x1dd   :  { %409 = vperm.xlu2 %657, %v691_v39  }
 0x1e4   :  { %406 = vperm.xlu1 %655, %v693_v41  }
 0x227   :  { %v392_v42 = vpop.permute.xlu2 %391 }
 0x228   :  { %v412_v47 = vperm.slane %v392_v42, %v984_v34 }
 0x22f   :  { %v404_v45 = vpop.permute.xlu2 %403 }
 0x230   :  { %v416_v58 = vperm.slane %v404_v45, %v984_v34 }
 0x237   :  { %v410_v56 = vpop.permute.xlu2 %409 }
 0x238   :  { %v418_v61 = vperm.slane %v410_v56, %v984_v34 }
 0x23e   :  { %v395_v38 = vpop.permute.xlu1 %394 }
 0x23f   :  { %v413_v49 = vperm.slane %v395_v38, %v984_v34 }
 0x240   :  { %v389_v44 = vpop.permute.xlu0 %388 }
 0x241   :  { %v411_v46 = vperm.slane %v389_v44, %v984_v34 }
 0x243   :  { %v419_v51 = vsel %vm319_vm1, %v412_v47, %v411_v46 }
 0x244   :  { %v420_v54 = vsel %vm321_vm2, %v413_v49, %v419_v51 }
 0x246   :  { %v398_v43 = vpop.permute.xlu1 %397 }
 0x247   :  { %v414_v52 = vperm.slane %v398_v43, %v984_v34 }
 0x249   :  { %v421_v55 = vsel %vm323_vm3, %v414_v52, %v420_v54 }
 0x24e   :  { %v401_v50 = vpop.permute.xlu1 %400 }
 0x24f   :  { %v415_v53 = vperm.slane %v401_v50, %v984_v34 }
 0x251   :  { %v422_v57 = vsel %vm325_vm4, %v415_v53, %v421_v55 }
 0x252   :  { %v423_v62 = vsel %vm327_vm5, %v416_v58, %v422_v57 }
 0x256   :  { %v407_v59 = vpop.permute.xlu1 %406 }
 0x257   :  { %v417_v60 = vperm.slane %v407_v59, %v984_v34 }
 0x259   :  { %v424_v63 = vsel %vm329_vm6, %v417_v60, %v423_v62 }
 0x25a   :  { %v425_v3 = vsel %vm331_vm7, %v418_v61, %v424_v63 }
 0x25b   :  { %v427_v4 = vsel %vm334_vm8, %v425_v3, 0.0 }
 0x25c   :  { %428 = vadd.xlane.f32.xlu1 %v427_v4 }
 0x2cf   :  { %v429_v5 = vpop.xlane.xlu1 %428 }
 0x2d0   :  { %694 = vrcp.f32 %v429_v5 }
 0x2d6   :  { %v695_v6 = vpop.eup %694 }
 0x2d7   :  { %v433_v7 = vperm.slane %v695_v6, 1  ;;  %v432_v8 = vperm.slane %v695_v6, 0  ;;  %v435_v11 = vperm.slane %v695_v6, 3  ;;  %v434_v12 = vperm.slane %v695_v6, 2 }
 0x2d8   :  { %v437_v15 = vperm.slane %v695_v6, 5  ;;  %v436_v16 = vperm.slane %v695_v6, 4  ;;  %v439_v19 = vperm.slane %v695_v6, 7  ;;  %v438_v20 = vperm.slane %v695_v6, 6 }
 0x2d9   :  { %v449_v9 = vmul.f32 %v681_v22, %v433_v7  ;;  %v448_v10 = vmul.f32 %v683_v24, %v432_v8  ;;  %v451_v13 = vmul.f32 %v685_v30, %v435_v11  ;;  %v450_v14 = vmul.f32 %v1002_v21, %v434_v12 }
 0x2da   :  { %v453_v17 = vmul.f32 %v687_v31, %v437_v15  ;;  %v452_v18 = vmul.f32 %v689_v37, %v436_v16  ;;  %v455_v25 = vmul.f32 %v691_v39, %v439_v19  ;;  %v454_v22 = vmul.f32 %v693_v41, %v438_v20 }
 0x2db   :  { %463 = vperm.xlu2 %657, %v449_v9   ;;  %458 = vperm.xlu0 %656, %v448_v10  }
 0x2e3   :  { %473 = vperm.xlu2 %657, %v451_v13   ;;  %468 = vperm.xlu0 %656, %v450_v14  }
 0x2eb   :  { %483 = vperm.xlu2 %657, %v453_v17   ;;  %478 = vperm.xlu0 %656, %v452_v18  }
 0x2f3   :  { %493 = vperm.xlu2 %657, %v455_v25   ;;  %488 = vperm.xlu0 %656, %v454_v22  }
 0x335   :  { %v464_v24 = vpop.permute.xlu2 %463 }
 0x336   :  { %v497_v21 = vmul.f32 %v464_v24, %v953_v40  ;;  %v578_v53 = vperm.slane %v464_v24, %v984_v34 }
 0x338   :  { %v511_v31 = vsel %vm105_vm0, %v497_v21, 0.0 }
 0x339   :  { %v512_v37 = vrot.slane %v511_v31, 4 }
 0x33b   :  { %v513_v45 = vadd.f32 %v512_v37, %v511_v31 }
 0x33d   :  { %v474_v26 = vpop.permute.xlu2 %473 }
 0x33e   :  { %v499_v35 = vmul.f32 %v474_v26, %v957_v48  ;;  %v580_v4 = vperm.slane %v474_v26, %v984_v34 }
 0x340   :  { %v525_v42 = vsel %vm105_vm0, %v499_v35, 0.0 }
 0x341   :  { %v526_v46 = vrot.slane %v525_v42, 4 }
 0x343   :  { %v527_v55 = vadd.f32 %v526_v46, %v525_v42 }
 0x345   :  { %v1022_v27 = vpop.permute.xlu2 %483  ;;  %v528_v7 = vrot.slane %v527_v55, 2 }
 0x346   :  { %v501_v40 = vmul.f32 %v1022_v27, %v944_v33  ;;  %v514_v33 = vrot.slane %v513_v45, 2  ;;  %v582_v14 = vperm.slane %v1022_v27, %v984_v34 }
 0x347   :  { %v529_v18 = vadd.f32 %v528_v7, %v527_v55 }
 0x348   :  { %v539_v47 = vsel %vm105_vm0, %v501_v40, 0.0  ;;  %v515_v3 = vadd.f32 %v514_v33, %v513_v45 }
 0x349   :  { %v540_v56 = vrot.slane %v539_v47, 4  ;;  %v530_v37 = vrot.slane %v529_v18, 1 }
 0x34a   :  { %v516_v13 = vrot.slane %v515_v3, 1 }
 0x34b   :  { %v541_v8 = vadd.f32 %v540_v56, %v539_v47 }
 0x34d   :  { %v459_v28 = vpop.permute.xlu0 %458  ;;  %v1029_v39 = vpop.permute.xlu2 %493  ;;  %v542_v19 = vrot.slane %v541_v8, 2 }
 0x34e   :  { %v496_v29 = vmul.f32 %v459_v28, %v939_v23  ;;  %v503_v23 = vmul.f32 %v1029_v39, %v968_v2  ;;  %v577_v50 = vperm.slane %v459_v28, %v984_v34  ;;  %v584_v22 = vperm.slane %v1029_v39, %v984_v34 }
 0x350   :  { %v504_v30 = vsel %vm105_vm0, %v496_v29, 0.0  ;;  %v585_v59 = vsel %vm319_vm1, %v578_v53, %v577_v50 }
 0x351   :  { %v505_v36 = vrot.slane %v504_v30, 4 }
 0x353   :  { %v506_v43 = vadd.f32 %v505_v36, %v504_v30  ;;  %v517_v36 = vadd.f32 %v516_v13, %v515_v3 }
 0x355   :  { %v469_v41 = vpop.permute.xlu0 %468  ;;  %v507_v51 = vrot.slane %v506_v43, 2 }
 0x356   :  { %v498_v38 = vmul.f32 %v469_v41, %v942_v32  ;;  %v553_v32 = vsel %vm105_vm0, %v503_v23, 0.0  ;;  %v579_v52 = vperm.slane %v469_v41, %v984_v34  ;;  %v543_v41 = vadd.f32 %v542_v19, %v541_v8 }
 0x357   :  { %v554_v58 = vrot.slane %v553_v32, 4  ;;  %v508_v60 = vadd.f32 %v507_v51, %v506_v43  ;;  %v531_v43 = vadd.f32 %v530_v37, %v529_v18 }
 0x358   :  { %v518_v44 = vsel %vm105_vm0, %v498_v38, 0.0  ;;  %v586_v61 = vsel %vm321_vm2, %v579_v52, %v585_v59 }
 0x359   :  { %v519_v48 = vrot.slane %v518_v44, 4  ;;  %v587_v9 = vsel %vm323_vm3, %v580_v4, %v586_v61  ;;  %v555_v10 = vadd.f32 %v554_v58, %v553_v32  ;;  %v509_v11 = vrot.slane %v508_v60, 1 }
 0x35b   :  { %v520_v49 = vadd.f32 %v519_v48, %v518_v44  ;;  %v556_v27 = vrot.slane %v555_v10, 2  ;;  %v510_v28 = vadd.f32 %v509_v11, %v508_v60  ;;  %v544_v44 = vrot.slane %v543_v41, 1 }
 0x35d   :  { %v521_v2 = vrot.slane %v520_v49, 2  ;;  %v479_v54 = vpop.permute.xlu0 %478  ;;  %v557_v39 = vadd.f32 %v556_v27, %v555_v10  ;;  %v568_v38 = vsel %vm319_vm1, %v517_v36, %v510_v28 }
 0x35e   :  { %v500_v57 = vmul.f32 %v479_v54, %v966_v1  ;;  %v581_v63 = vperm.slane %v479_v54, %v984_v34 }
 0x35f   :  { %v522_v5 = vadd.f32 %v521_v2, %v520_v49  ;;  %v558_v48 = vrot.slane %v557_v39, 1  ;;  %v545_v49 = vadd.f32 %v544_v44, %v543_v41 }
 0x360   :  { %v532_v62 = vsel %vm105_vm0, %v500_v57, 0.0  ;;  %v588_v12 = vsel %vm325_vm4, %v581_v63, %v587_v9 }
 0x361   :  { %v533_v6 = vrot.slane %v532_v62, 4  ;;  %v523_v15 = vrot.slane %v522_v5, 1  ;;  %v589_v26 = vsel %vm327_vm5, %v582_v14, %v588_v12  ;;  %v559_v51 = vadd.f32 %v558_v48, %v557_v39 }
 0x363   :  { %v534_v1 = vadd.f32 %v533_v6, %v532_v62  ;;  %v524_v30 = vadd.f32 %v523_v15, %v522_v5 }
 0x365   :  { %v535_v16 = vrot.slane %v534_v1, 2  ;;  %v489_v17 = vpop.permute.xlu0 %488  ;;  %v569_v42 = vsel %vm321_vm2, %v524_v30, %v568_v38 }
 0x366   :  { %v502_v20 = vmul.f32 %v489_v17, %v964_v0  ;;  %v583_v25 = vperm.slane %v489_v17, %v984_v34  ;;  %v570_v46 = vsel %vm323_vm3, %v531_v43, %v569_v42 }
 0x367   :  { %v536_v24 = vadd.f32 %v535_v16, %v534_v1 }
 0x368   :  { %v546_v21 = vsel %vm105_vm0, %v502_v20, 0.0  ;;  %v590_v29 = vsel %vm329_vm6, %v583_v25, %v589_v26 }
 0x369   :  { %v537_v31 = vrot.slane %v536_v24, 1  ;;  %v547_v35 = vrot.slane %v546_v21, 4  ;;  %v591_v0 = vsel %vm331_vm7, %v584_v22, %v590_v29 }
 0x36a   :  { %593 = vst.msk [vmem:[#allocation12] sm:$0xff] %vm334_vm8, %v591_v0 }
 0x36b   :  { %v548_v34 = vadd.f32 %v547_v35, %v546_v21  ;;  %615 = dma.vmem_to_hbm [thread:$0]  %s611_s11, 128, %s613_s14, [#allocation13]   ;;  %v538_v40 = vadd.f32 %v537_v31, %v536_v24 }
 0x36d   :  { %v549_v23 = vrot.slane %v548_v34, 2  ;;  %v571_v50 = vsel %vm325_vm4, %v538_v40, %v570_v46 }
 0x36e   :  { %v572_v52 = vsel %vm327_vm5, %v545_v49, %v571_v50 }
 0x36f   :  { %v550_v45 = vadd.f32 %v549_v23, %v548_v34 }
 0x371   :  { %v551_v47 = vrot.slane %v550_v45, 1 }
 0x373   :  { %v552_v32 = vadd.f32 %v551_v47, %v550_v45 }
 0x375   :  { %v573_v33 = vsel %vm329_vm6, %v552_v32, %v572_v52 }
 0x376   :  { %v574_v53 = vsel %vm331_vm7, %v559_v51, %v573_v33 }
 0x377   :  { %576 = vst.msk [vmem:[#allocation11] sm:$0xff] %vm105_vm0, %v574_v53 }
 0x378   :  { %604 = dma.vmem_to_hbm [thread:$0]  %s600_s15, 128, %s602_s18, [#allocation5]  }
 0x379   :  { %846 = dma.done.wait [#allocation5], 128  }
 0x37a   :  { %847 = vsyncadd [#allocation5], 4294967168 }
 0x37b   :  { %848 = dma.done.wait [#allocation13], 128  }
 0x37c   :  { %849 = vsyncadd [#allocation13], 4294967168 }
 0x37d   :  { %624 = vsyncpa [#allocation4], 1 }
 0x37e   :  { %625 = vsyncpa [#allocation7], 1 }
 0x37f   :  { %626 = vsyncpa [#allocation10], 1 }
 0x380   :  { %627 = vsyncpa [#allocation5], 1 }
 0x381   :  { %628 = vsyncpa [#allocation13], 1 }

</bundles_post_ra>
